<compile_context>
chip_gen: v7x
topology: tpu7x:2x2x1
jax: 0.10.0
libtpu: 0.0.40
codegen_flags: <defaults>
</compile_context>

<pallas_src>
import functools
import math

import jax
import jax.numpy as jnp
from jax.experimental import pallas as pl
from jax.experimental.pallas import tpu as pltpu

_LANE = 128
_MiB = 1024 * 1024


def _round_up(v, m):
    return (v + m - 1) // m * m


def _tpu_vmem_capacity_bytes():
    """Physical VMEM per core; conservative (v7x-sized) fallback if unknown."""
    try:
        info = pltpu.get_tpu_info()
        cap = int(getattr(info, "vmem_capacity_bytes"))
        if cap > 0:
            return cap
    except Exception:
        pass
    return 64 * _MiB


def _choose_m_tile(M, cap):
    """Pick (tm, Mp) with tm | Mp, Mp >= M, tm % 8 == 0.

    Prefers >= 2 blocks when M is large enough (keeps both v7x TensorCores
    busy) and a divisor of M (avoids a zero-row pad pass over x).
    """
    cap = max(8, (cap // 8) * 8)
    M8 = _round_up(M, 8)
    if M8 <= cap:
        if M8 >= 256 and M8 % 16 == 0:
            return M8 // 2, M8          # two blocks -> both cores get work
        return M8, M8
    if M % 8 == 0:
        for t in range(cap, 7, -8):     # largest multiple-of-8 divisor <= cap
            if M % t == 0:
                return t, M
    tm = min(cap, 512)                  # rare: zero-row pad (one pass over x)
    return tm, _round_up(M, tm)


# --------------------------------------------------------------------------
# Kernels
# --------------------------------------------------------------------------
def _linear_resident_kernel(x_ref, w_ref, b_ref, o_ref, *, compute_dtype):
    # Whole (K, N) weight is VMEM-resident (constant block index); only M is
    # tiled.  x is cast right before the dot (no wrapper cast pass); single K
    # step -> no f32 scratch, the biased result goes straight to the output.
    x = x_ref[...].astype(compute_dtype)
    acc = jnp.dot(x, w_ref[...], preferred_element_type=jnp.float32)
    o_ref[...] = (acc + b_ref[...]).astype(o_ref.dtype)


def _linear_ktiled_kernel(x_ref, w_ref, b_ref, o_ref, acc_ref, *,
                          compute_dtype):
    # Fallback for weights that do not fit VMEM: K is the innermost
    # ("arbitrary") grid axis, f32 accumulator, bias fused into the finalize.
    k = pl.program_id(1)

    @pl.when(k == 0)
    def _():
        acc_ref[...] = jnp.zeros_like(acc_ref)

    acc_ref[...] += jnp.dot(x_ref[...].astype(compute_dtype), w_ref[...],
                            preferred_element_type=jnp.float32)

    @pl.when(k == pl.num_programs(1) - 1)
    def _():
        o_ref[...] = (acc_ref[...] + b_ref[...]).astype(o_ref.dtype)


# --------------------------------------------------------------------------
# Linear wrapper
# --------------------------------------------------------------------------
def pallas_linear(x2d, w_kn, bias_n, *, compute_dtype=jnp.bfloat16,
                  out_dtype=None, force_ktiled=False):
    """y = x2d @ w_kn + bias_n -> (M, N) in out_dtype.

    x2d: (M, K) in its stored dtype (cast to compute_dtype inside the kernel).
    w_kn: (K, N), ideally already stored in compute_dtype (prepared once).
    bias_n: (N,).
    """
    M, K = x2d.shape
    K2, N = w_kn.shape
    assert K == K2 and bias_n.shape == (N,)
    if out_dtype is None:
        out_dtype = x2d.dtype

    xsz = jnp.dtype(x2d.dtype).itemsize
    csz = jnp.dtype(compute_dtype).itemsize
    osz = jnp.dtype(out_dtype).itemsize

    # Weight/bias in the compute dtype (no-op when prepared upstream).
    if w_kn.dtype != compute_dtype:
        w_kn = w_kn.astype(compute_dtype)
    b2d = bias_n.astype(jnp.float32).reshape(1, N)

    # ---- generation-gated VMEM budget & tile caps ----------------------
    vmem_phys = _tpu_vmem_capacity_bytes()
    big_vmem = vmem_phys >= 100 * _MiB                 # v5e / v6e (128 MiB)
    vmem_budget = min(vmem_phys * 3 // 4,
                      96 * _MiB if big_vmem else 48 * _MiB)
    tm_cap = 1024 if big_vmem else 512

    w_bytes = K * N * csz
    resident_ok = (not force_ktiled) and (2 * w_bytes <= vmem_budget // 2)

    if resident_ok:
        # ---- Path A: resident weight, grid over M only -----------------
        per_row = 2 * K * xsz + 2 * N * osz
        rows_budget = max(8, (vmem_budget - 2 * w_bytes - 2 * N * 4)
                          // max(per_row, 1))
        tm, Mp = _choose_m_tile(M, min(tm_cap, int(rows_budget)))
        xp = x2d if Mp == M else jnp.pad(x2d, ((0, Mp - M), (0, 0)))

        kernel = functools.partial(_linear_resident_kernel,
                                   compute_dtype=compute_dtype)
        vmem_est = 2 * tm * K * xsz + 2 * tm * N * osz + 2 * w_bytes + 2 * N * 4
        out = pl.pallas_call(
            kernel,
            out_shape=jax.ShapeDtypeStruct((Mp, N), out_dtype),
            grid_spec=pltpu.PrefetchScalarGridSpec(
                num_scalar_prefetch=0,
                grid=(Mp // tm,),
                in_specs=[
                    pl.BlockSpec((tm, K), lambda i: (i, 0)),
                    pl.BlockSpec((K, N), lambda i: (0, 0)),   # VMEM-resident
                    pl.BlockSpec((1, N), lambda i: (0, 0)),
                ],
                out_specs=pl.BlockSpec((tm, N), lambda i: (i, 0)),
            ),
            compiler_params=pltpu.CompilerParams(
                dimension_semantics=("parallel",),
                vmem_limit_bytes=int(min(max(vmem_est + 4 * _MiB, 32 * _MiB),
                                         vmem_budget)),
            ),
            cost_estimate=pl.CostEstimate(
                flops=2 * Mp * K * N, transcendentals=0,
                bytes_accessed=Mp * K * xsz + w_bytes + N * 4 + Mp * N * osz),
        )(xp, w_kn, b2d)
    else:
        # ---- Path B: K-tiled fallback (weight streamed along K) --------
        tk = None
        if K % _LANE == 0:
            tk_cap = 1024 if big_vmem else 512
            for t in range(min(tk_cap, K), _LANE - 1, -_LANE):
                if K % t == 0:
                    tk = t
                    break
        if tk is None:
            tk = K                                   # no clean split
        per_row = 2 * tk * xsz + 2 * N * osz + N * 4
        w_blk = 2 * tk * N * csz
        rows_budget = max(8, (vmem_budget - w_blk - 2 * N * 4)
                          // max(per_row, 1))
        tm, Mp = _choose_m_tile(M, min(tm_cap, int(rows_budget)))
        xp = x2d if Mp == M else jnp.pad(x2d, ((0, Mp - M), (0, 0)))

        kernel = functools.partial(_linear_ktiled_kernel,
                                   compute_dtype=compute_dtype)
        vmem_est = (2 * tm * tk * xsz + w_blk + 2 * tm * N * osz
                    + tm * N * 4 + 2 * N * 4)
        out = pl.pallas_call(
            kernel,
            out_shape=jax.ShapeDtypeStruct((Mp, N), out_dtype),
            grid_spec=pltpu.PrefetchScalarGridSpec(
                num_scalar_prefetch=0,
                grid=(Mp // tm, K // tk),
                in_specs=[
                    pl.BlockSpec((tm, tk), lambda i, k: (i, k)),
                    pl.BlockSpec((tk, N), lambda i, k: (k, 0)),
                    pl.BlockSpec((1, N), lambda i, k: (0, 0)),
                ],
                out_specs=pl.BlockSpec((tm, N), lambda i, k: (i, 0)),
                scratch_shapes=[pltpu.VMEM((tm, N), jnp.float32)],
            ),
            compiler_params=pltpu.CompilerParams(
                dimension_semantics=("parallel", "arbitrary"),
                vmem_limit_bytes=int(min(max(vmem_est + 4 * _MiB, 32 * _MiB),
                                         vmem_budget)),
            ),
            cost_estimate=pl.CostEstimate(
                flops=2 * Mp * K * N, transcendentals=0,
                bytes_accessed=(Mp * K * xsz + (Mp // tm) * K * N * csz
                                + N * 4 + Mp * N * osz)),
        )(xp, w_kn, b2d)

    if Mp != M:
        out = out[:M]
    return out


# --------------------------------------------------------------------------
# PSUpsamplerBlock
# --------------------------------------------------------------------------
def prepare_ps_params(w_kn, bias_n, *, d_model_out, scale_factor,
                      compute_dtype=jnp.bfloat16):
    """One-time parameter preparation (call OUTSIDE the jitted forward).

    w_kn is the (d_model, c) transpose of the PyTorch weight.  Columns (and
    bias) are permuted from PyTorch channel order ch = d*s^2 + q into shuffle
    order col = q*d_out + d, and the weight is cast to the compute dtype once.
    """
    K, N = w_kn.shape
    s = scale_factor
    d_out = d_model_out
    assert N == d_out * s * s
    w_p = w_kn.reshape(K, d_out, s * s).transpose(0, 2, 1).reshape(K, N)
    b_p = bias_n.reshape(d_out, s * s).T.reshape(N)
    return w_p.astype(compute_dtype), b_p.astype(jnp.float32)


def ps_upsampler_block(x, w_prepped, bias_prepped, *, d_model_out,
                       scale_factor, compute_dtype=jnp.bfloat16,
                       out_dtype=None, force_ktiled=False):
    """Forward of PSUpsamplerBlock using params from prepare_ps_params.

    x: (bs, l, d_model) with l = 2*R*R.  Returns (bs, l*s^2, d_model_out) in
    out_dtype (default x.dtype; pass bf16 to halve layout-pass HBM traffic at
    a precision cost).
    """
    bs, l, d_model = x.shape
    s = scale_factor
    d_out = d_model_out
    c = d_out * s * s
    assert w_prepped.shape == (d_model, c)
    R = int(math.isqrt(l // 2))
    assert 2 * R * R == l, "sequence length must equal 2*R*R"
    Rs = R * s
    if out_dtype is None:
        out_dtype = x.dtype

    # --- hot path: the Linear, in Pallas --------------------------------
    y = pallas_linear(x.reshape(bs * l, d_model), w_prepped, bias_prepped,
                      compute_dtype=compute_dtype, out_dtype=out_dtype,
                      force_ktiled=force_ktiled)

    # --- pixel-shuffle layout --------------------------------------------
    # With columns pre-permuted to (q, d) order (q = v // 2, v = pL*s^2+i*s+j)
    # the matmul output viewed per row is y[b, p2, h, w, q, d] and
    #   out[b, pL, h, i, w, j, d] = y[b, v % 2, h, w, v // 2, d].
    if s % 2 == 0:
        # Even s: v % 2 == j % 2 and q splits exactly into (pL, i, j//2), so a
        # single materialized transpose finishes the layout.
        y = y.reshape(bs, 2, R, R, 2, s, s // 2, d_out)  # (b,p2,h,w,pL,i,jhi,d)
        y = jnp.transpose(y, (0, 4, 2, 5, 3, 6, 1, 7))   # (b,pL,h,i,w,jhi,p2,d)
    else:
        # Odd s: parity p2 = (pL+i+j) % 2 couples rows and columns -> two
        # passes: interleave the halves along v = 2q + p2, then the spatial
        # transpose (moves s*d_out-wide contiguous chunks).
        y = y.reshape(bs, 2, R, R, s * s, d_out)         # (b,p2,h,w,q,d)
        y = jnp.transpose(y, (0, 2, 3, 4, 1, 5))         # (b,h,w,q,p2,d)
        y = y.reshape(bs, R, R, 2, s, s, d_out)          # (b,h,w,pL,i,j,d)
        y = jnp.transpose(y, (0, 3, 1, 4, 2, 5, 6))      # (b,pL,h,i,w,j,d)
    # TODO(synk): fuse this transpose into the kernel epilogue via an output
    # BlockSpec over (b, pL, h)-aligned slabs once the per-slab minor dim
    # (d_model_out) is >= 128; until then it stays a single XLA pass.
    return y.reshape(bs, 2 * Rs * Rs, d_out)


def _reference_chain(x, w_kn, bias_n, *, d_model_out, scale_factor,
                     compute_dtype):
    """Literal jnp translation of the PyTorch permute/reshape chain."""
    bs, l, d_model = x.shape
    s = scale_factor
    c = d_model_out * s * s
    y = jnp.dot(x.astype(compute_dtype).reshape(bs * l, d_model),
                w_kn.astype(compute_dtype),
                preferred_element_type=jnp.float32)
    y = (y + bias_n.astype(jnp.float32)).astype(x.dtype).reshape(bs, l, c)
    R = int(math.isqrt(l // 2))
    y = jnp.transpose(y, (0, 2, 1)).reshape(bs, c * 2, R, R)
    C_out = (c * 2) // (s * s)
    y = y.reshape(bs, C_out, s, s, R, R)
    y = jnp.transpose(y, (0, 1, 4, 2, 5, 3)).reshape(bs, C_out, R * s, R * s)
    y = y.reshape(bs, d_model_out, R * s * R * s * 2)
    return jnp.transpose(y, (0, 2, 1))


if __name__ == "__main__":
    def run_case(bs, d_model, d_model_out, s, R, *, force_ktiled=False):
        l = 2 * R * R
        c = d_model_out * s * s
        key = jax.random.PRNGKey(0)
        kx, kw, kb = jax.random.split(key, 3)
        x = jax.random.normal(kx, (bs, l, d_model), dtype=jnp.float32)
        bound = 1.0 / math.sqrt(d_model)
        w_kn = jax.random.uniform(kw, (d_model, c), jnp.float32, -bound, bound)
        bias_n = jax.random.uniform(kb, (c,), jnp.float32, -bound, bound)

        w_p, b_p = prepare_ps_params(w_kn, bias_n, d_model_out=d_model_out,
                                     scale_factor=s,
                                     compute_dtype=jnp.bfloat16)
        fwd = jax.jit(functools.partial(
            ps_upsampler_block, d_model_out=d_model_out, scale_factor=s,
            compute_dtype=jnp.bfloat16, force_ktiled=force_ktiled))
        out = jax.block_until_ready(fwd(x, w_p, b_p))
        assert out.shape == (bs, l * s * s, d_model_out)

        # Matched precision (bf16 operands, f32 accumulate) vs. the literal
        # PyTorch chain -> validates matmul + pre-permuted-weight layout.
        ref_m = _reference_chain(x, w_kn, bias_n, d_model_out=d_model_out,
                                 scale_factor=s, compute_dtype=jnp.bfloat16)
        err = float(jnp.max(jnp.abs(out - ref_m)))
        assert jnp.allclose(out, ref_m, atol=1e-4, rtol=1e-4), err

        # Loose check against the full-f32 reference (bounds bf16 error).
        ref_f = _reference_chain(x, w_kn, bias_n, d_model_out=d_model_out,
                                 scale_factor=s, compute_dtype=jnp.float32)
        assert jnp.allclose(out, ref_f, atol=5e-2, rtol=5e-2)

    # Even scale factor (single-transpose layout), resident-weight fast path.
    run_case(bs=2, d_model=32, d_model_out=8, s=2, R=4)
    # Odd scale factor (two-transpose layout) -- previously untested branch.
    run_case(bs=2, d_model=32, d_model_out=8, s=3, R=4)
    # K-tiled fallback path (weight streamed along K, f32 accumulator).
    run_case(bs=2, d_model=1280, d_model_out=8, s=2, R=4, force_ktiled=True)

    print("KERNEL_OK")
</pallas_src>

<mosaic_0001>
module attributes {stable_mosaic.version = 11 : i64} {
  func.func @_linear_resident_kernel(%arg0: i32, %arg1: memref<64x32xf32, #tpu.memory_space<vmem>>, %arg2: memref<32x32xbf16, #tpu.memory_space<vmem>>, %arg3: memref<1x32xf32, #tpu.memory_space<vmem>>, %arg4: memref<64x32xf32, #tpu.memory_space<vmem>>) attributes {dimension_semantics = [#tpu.dimension_semantics<parallel>], iteration_bounds = array<i64: 1>, scalar_prefetch = 0 : i64, scratch_operands = 0 : i64, tpu.core_type = #tpu.core_type<tc>, window_params = [{transform_indices = @transform_0, window_bounds = array<i64: 64, 32>}, {pipeline_mode = #tpu.pipeline_mode<synchronous>, transform_indices = @transform_1, window_bounds = array<i64: 32, 32>}, {pipeline_mode = #tpu.pipeline_mode<synchronous>, transform_indices = @transform_2, window_bounds = array<i64: 1, 32>}, {transform_indices = @transform_3, window_bounds = array<i64: 64, 32>}]} {
    %c0 = arith.constant 0 : index
    %c0_0 = arith.constant 0 : index
    %0 = vector.load %arg1[%c0, %c0_0] : memref<64x32xf32, #tpu.memory_space<vmem>>, vector<64x32xf32>
    %1 = arith.truncf %0 : vector<64x32xf32> to vector<64x32xbf16>
    %c0_1 = arith.constant 0 : index
    %c0_2 = arith.constant 0 : index
    %2 = vector.load %arg2[%c0_1, %c0_2] : memref<32x32xbf16, #tpu.memory_space<vmem>>, vector<32x32xbf16>
    %cst = arith.constant dense<0.000000e+00> : vector<64x32xf32>
    %3 = tpu.matmul %1, %2, %cst {dimension_numbers = #tpu.dot_dimension_numbers<[1], [0], [0], [1], [0, 0, 1, 1], [], []>} : vector<64x32xbf16>, vector<32x32xbf16>, vector<64x32xf32> -> vector<64x32xf32>
    %c0_3 = arith.constant 0 : index
    %c0_4 = arith.constant 0 : index
    %4 = vector.load %arg3[%c0_3, %c0_4] : memref<1x32xf32, #tpu.memory_space<vmem>>, vector<1x32xf32>
    %5 = vector.broadcast %4 : vector<1x32xf32> to vector<64x32xf32>
    %6 = arith.addf %3, %5 : vector<64x32xf32>
    %c0_5 = arith.constant 0 : index
    %c0_6 = arith.constant 0 : index
    %7 = vector.load %arg4[%c0_5, %c0_6] : memref<64x32xf32, #tpu.memory_space<vmem>>, vector<64x32xf32>
    tpu.vector_store %arg4[%c0_5, %c0_6], %6 {strides = array<i32>} : memref<64x32xf32, #tpu.memory_space<vmem>>, vector<64x32xf32>,
    return
  }
  func.func @transform_0(%arg0: i32) -> (i32, i32) {
    %c0_i32 = arith.constant 0 : i32
    %c0_i32_0 = arith.constant 0 : i32
    return %arg0, %c0_i32 : i32, i32
  }
  func.func @transform_1(%arg0: i32) -> (i32, i32) {
    %c0_i32 = arith.constant 0 : i32
    %c0_i32_0 = arith.constant 0 : i32
    %c0_i32_1 = arith.constant 0 : i32
    return %c0_i32, %c0_i32_0 : i32, i32
  }
  func.func @transform_2(%arg0: i32) -> (i32, i32) {
    %c0_i32 = arith.constant 0 : i32
    %c0_i32_0 = arith.constant 0 : i32
    %c0_i32_1 = arith.constant 0 : i32
    return %c0_i32, %c0_i32_0 : i32, i32
  }
  func.func @transform_3(%arg0: i32) -> (i32, i32) {
    %c0_i32 = arith.constant 0 : i32
    %c0_i32_0 = arith.constant 0 : i32
    return %arg0, %c0_i32 : i32, i32
  }
}

</mosaic_0001>

<bundles_post_ra>
// kernel: ps_upsampler_block.1
= control target key start
LH: loop header
LB: loop body
LE: loop exit
PB: predicated region body
PF: predicated region fallthrough
CT: control target
= control target key end

     0   :  { %8 = vsyncpa [#allocation3], 0  ;;  %s344_s0 = inlined_call_operand.hbm [shape: f32[64,32], index: 0, kind: input, shape index: {}]   ;;  %s345_s1 = inlined_call_operand.hbm [shape: bf16[32,32], index: 1, kind: input, shape index: {}]   ;;  %s346_s2 = inlined_call_operand.vmem [shape: f32[1,32], index: 2, kind: input, shape index: {}]   ;;  %s347_s3 = inlined_call_operand.vmem [shape: f32[64,32], index: 3, kind: output, shape index: {}]  }
   0x1   :  { %9 = vsyncpa [#allocation5], 0  ;;  %s255_s12 = smov [#allocation2]   ;;  %s207_s16 = scalar_lea.hbm %s344_s0, 1024 }
   0x2   :  { %s15_s13 = sshll.u32 %s255_s12, 4  ;;  %p208_p0 = scmp.ne.s32.totalorder %s344_s0, %s207_s16  ;;  %s16_s13 = int_to_ptr.vmem [resolvable:$true] %s15_s13 }
   0x3   :  { %p211_p1 = scmp.lt.u32.totalorder %s207_s16, %s344_s0 }
   0x5   :  { %p213_p2 = pnand %p211_p1, %p208_p0 }
   0x7   :  { %216 = shalt.err (!%p213_p2)
}
   0x8   :  { %s217_s21 = scalar_lea.vmem %s16_s13, 1024  ;;  %p222_p4 = scmp.lt.s32.totalorder %s16_s13, %s16_s13 }
   0x9   :  { %p218_p3 = scmp.ne.s32.totalorder %s16_s13, %s217_s21  ;;  %p223_p5 = scmp.lt.s32.totalorder %s217_s21, %s217_s21 }
   0xb   :  { %p224_p6 = por %p223_p5, %p222_p4 }
   0xd   :  { %p225_p7 = pnand %p224_p6, %p218_p3 }
   0xf   :  { %228 = shalt.err (!%p225_p7)
}
  0x10   :  { %s256_s22 = smov 128   ;;  %s257_s23 = smov 8  }
  0x11   :  { %21 = dma.hbm_to_vmem [thread:$0]  %s344_s0, 1024, %s16_s13, [#allocation3], %s256_s22, %s256_s22, %s257_s23  }
  0x12   :  { %s258_s26 = smov [#allocation4]   ;;  %s229_s30 = scalar_lea.hbm %s345_s1, 256 }
  0x13   :  { %s27_s27 = sshll.u32 %s258_s26, 4  ;;  %p230_p8 = scmp.ne.s32.totalorder %s345_s1, %s229_s30  ;;  %s28_s27 = int_to_ptr.vmem [resolvable:$true] %s27_s27 }
  0x14   :  { %p233_p9 = scmp.lt.u32.totalorder %s229_s30, %s345_s1 }
  0x16   :  { %p235_p10 = pnand %p233_p9, %p230_p8 }
  0x18   :  { %238 = shalt.err (!%p235_p10)
}
  0x19   :  { %s239_s8 = scalar_lea.vmem %s28_s27, 256  ;;  %p244_p12 = scmp.lt.s32.totalorder %s28_s27, %s28_s27 }
  0x1a   :  { %p240_p11 = scmp.ne.s32.totalorder %s28_s27, %s239_s8  ;;  %p245_p13 = scmp.lt.s32.totalorder %s239_s8, %s239_s8 }
  0x1c   :  { %p246_p0 = por %p245_p13, %p244_p12 }
  0x1e   :  { %p247_p1 = pnand %p246_p0, %p240_p11 }
  0x20   :  { %250 = shalt.err (!%p247_p1)
}
  0x21   :  { %s259_s0 = smov 64   ;;  %s260_s9 = smov 4  }
  0x22   :  { %33 = dma.hbm_to_vmem [thread:$0]  %s345_s1, 256, %s28_s27, [#allocation5], %s259_s0, %s259_s0, %s260_s9  }
  0x23   :  { %251 = dma.done.wait [#allocation3], 1024  }
  0x24   :  { %252 = vsyncadd [#allocation3], 4294966272 }
  0x25   :  { %253 = dma.done.wait [#allocation5], 256  }
  0x26   :  { %254 = vsyncadd [#allocation5], 4294967040  ;;  %v205_v0 = vld [vmem:[#allocation4] sm:$0xff]   ;;  %v206_v1 = vld [vmem:[#allocation4 + $0x8] sm:$0xff]   ;;  %vm78_vm0 = vcmask 261120  }
  0x27   :  { %183 = vmatprep.subr.bf16.mxu0 %v205_v0  ;;  %195 = vmatprep.subr.bf16.mxu1 %v205_v0  ;;  %v43_v2 = vld [vmem:[#allocation2] sm:$0xff]  ;;  %v44_v3 = vld [vmem:[#allocation2 + $0x8] sm:$0xff]  ;;  %v45_v7 = vld [vmem:[#allocation2 + $0x10] sm:$0xff] }
  0x28   :  { %v47_v4 = vld [vmem:[#allocation2 + $0x20] sm:$0xff]  ;;  %184 = vmatpush3.bf16.msra.mxu0 %v205_v0  ;;  %197 = vmatpush3.bf16.msra.mxu1 %v205_v0  ;;  %v51_v5 = vpack.c.bf16 %v44_v3, %v43_v2  ;;  %v48_v6 = vld [vmem:[#allocation2 + $0x28] sm:$0xff]  ;;  %v46_v8 = vld [vmem:[#allocation2 + $0x18] sm:$0xff] }
  0x29   :  { %185 = vmatprep.subr.bf16.mxu0 %v206_v1  ;;  %196 = vmatprep.subr.bf16.mxu1 %v206_v1  ;;  %v53_v9 = vpack.c.bf16 %v48_v6, %v47_v4  ;;  %v49_v10 = vld [vmem:[#allocation2 + $0x30] sm:$0xff]  ;;  %v50_v11 = vld [vmem:[#allocation2 + $0x38] sm:$0xff]  ;;  %v52_v12 = vpack.c.bf16 %v46_v8, %v45_v7  ;;  %v170_v14 = vld [vmem:[%s346_s2] ss:$0 sm:$0xff] }
  0x2a   :  { %187 = vmatprep.mubr.msk.bf16.mxu0 %vm78_vm0, %v51_v5  ;;  %v54_v13 = vpack.c.bf16 %v50_v11, %v49_v10 }
  0x2b   :  { %191 = vmatprep.mubr.msk.bf16.mxu1 %vm78_vm0, %v53_v9 }
  0x2c   :  { %186 = vmatpush3.bf16.msra.mxu0 %v206_v1  ;;  %198 = vmatpush3.bf16.msra.mxu1 %v206_v1 }
  0x2f   :  { %188 = vmatmul.mubr.msk.bf16.vlgmr.msra.gmra.mrb[0].mxu0 %vm78_vm0, %v52_v12  ;;  %192 = vmatmul.mubr.msk.bf16.vlgmr.msra.gmra.mrb[0].mxu1 %vm78_vm0, %v54_v13 }
 0x102   :  { %v189_v15 = vpop.f32.mrb[0].mxu0  ;;  %v193_v16 = vpop.f32.mrb[0].mxu1 }
 0x103   :  { %v134_v17 = vadd.f32 %v189_v15, %v170_v14  ;;  %v150_v18 = vadd.f32 %v193_v16, %v170_v14  ;;  %v125_v19 = vpop.f32.mrb[1].mxu0  ;;  %v141_v20 = vpop.f32.mrb[1].mxu1 }
 0x104   :  { %v126_v21 = vadd.f32 %v170_v14, %v125_v19  ;;  %v142_v22 = vadd.f32 %v170_v14, %v141_v20  ;;  %v190_v23 = vpop.f32.mrb[2].mxu0  ;;  %v194_v24 = vpop.f32.mrb[2].mxu1 }
 0x105   :  { %158 = vst.msk [vmem:[%s347_s3 + $0x10] sm:$0xff] %vm78_vm0, %v134_v17  ;;  %162 = vst.msk [vmem:[%s347_s3 + $0x30] sm:$0xff] %vm78_vm0, %v150_v18  ;;  %v137_v25 = vadd.f32 %v190_v23, %v170_v14  ;;  %v153_v26 = vadd.f32 %v194_v24, %v170_v14  ;;  %v128_v27 = vpop.f32.mrb[3].mxu0  ;;  %v144_v28 = vpop.f32.mrb[3].mxu1 }
 0x106   :  { %156 = vst.msk [vmem:[%s347_s3] sm:$0xff] %vm78_vm0, %v126_v21  ;;  %160 = vst.msk [vmem:[%s347_s3 + $0x20] sm:$0xff] %vm78_vm0, %v142_v22  ;;  %v129_v29 = vadd.f32 %v170_v14, %v128_v27  ;;  %v145_v30 = vadd.f32 %v170_v14, %v144_v28 }
 0x107   :  { %159 = vst.msk [vmem:[%s347_s3 + $0x18] sm:$0xff] %vm78_vm0, %v137_v25  ;;  %163 = vst.msk [vmem:[%s347_s3 + $0x38] sm:$0xff] %vm78_vm0, %v153_v26 }
 0x108   :  { %157 = vst.msk [vmem:[%s347_s3 + $0x8] sm:$0xff] %vm78_vm0, %v129_v29  ;;  %161 = vst.msk [vmem:[%s347_s3 + $0x28] sm:$0xff] %vm78_vm0, %v145_v30 }
 0x109   :  { %168 = vsyncpa [#allocation3], 1 }
 0x10a   :  { %169 = vsyncpa [#allocation5], 1 }

</bundles_post_ra>
